<compile_context>
chip_gen: v7x
topology: tpu7x:2x2x1
jax: 0.10.0
libtpu: 0.0.40
codegen_flags: <defaults>
</compile_context>

<pallas_src>
import jax
import jax.numpy as jnp
from jax.experimental import pallas as pl
from jax.experimental.pallas import tpu as pltpu


def _round_up(x, m):
    return ((x + m - 1) // m) * m


_VMEM_LIMIT = 64 * 1024 * 1024


# --------------------------------------------------------------------------- #
# One-time weight packing (hoisted out of the per-step path)
# --------------------------------------------------------------------------- #
def pack_lstm_params(params, compute_dtype=jnp.bfloat16):
    """Pack torch-convention per-gate weights into MXU-friendly matrices.

    Returns Wx of shape (Ip, 4*Hp) and Wh of shape (Hp, 4*Hp) in `compute_dtype`
    (columns grouped per gate, order i, f, o, g) and an f32 bias row (1, 4*Hp).
    Padded rows/columns are zero, so padded gate columns evaluate to
    i = f = o = 0.5, g = 0 and padded state columns stay exactly 0.
    """
    H, I = params["Wxi"].shape
    Ip = _round_up(max(I, 1), 128)
    Hp = _round_up(max(H, 1), 128)

    def xblk(w):   # torch Linear weight (H, I) -> (Ip, Hp): x @ W.T, zero-padded
        return jnp.zeros((Ip, Hp), jnp.float32).at[:I, :H].set(w.T.astype(jnp.float32))

    def hblk(w):   # (H, H) -> (Hp, Hp)
        return jnp.zeros((Hp, Hp), jnp.float32).at[:H, :H].set(w.T.astype(jnp.float32))

    def bblk(b):
        return jnp.zeros((Hp,), jnp.float32).at[:H].set(b.astype(jnp.float32))

    wx = jnp.concatenate(
        [xblk(params["Wxi"]), xblk(params["Wxf"]),
         xblk(params["Wxo"]), xblk(params["Wxc"])], axis=1
    ).astype(compute_dtype)                                          # (Ip, 4*Hp)

    wh = jnp.concatenate(
        [hblk(params["Whi"]), hblk(params["Whf"]),
         hblk(params["Who"]), hblk(params["Whc"])], axis=1
    ).astype(compute_dtype)                                          # (Hp, 4*Hp)

    b = jnp.concatenate(
        [bblk(params["bxi"]), bblk(params["bxf"]),
         bblk(params["bxo"]), bblk(params["bxc"])], axis=0
    )[None, :]                                                       # (1, 4*Hp) f32

    return {"wx": wx, "wh": wh, "b": b, "I": I, "H": H, "Ip": Ip, "Hp": Hp,
            "compute_dtype": compute_dtype}


# --------------------------------------------------------------------------- #
# Single-step kernel (matches the PyTorch module's forward exactly)
# --------------------------------------------------------------------------- #
def _lstm_step_kernel(x_ref, h_ref, c_ref, wx_ref, wh_ref, b_ref, ht_ref, ct_ref):
    Hp = ct_ref.shape[-1]
    # Two MXU matmuls (same total K work as one fused matmul, no LHS repack),
    # bf16 in, f32 accumulate.
    gates = (jnp.dot(x_ref[...], wx_ref[...], preferred_element_type=jnp.float32)
             + jnp.dot(h_ref[...], wh_ref[...], preferred_element_type=jnp.float32)
             + b_ref[...])

    i_t = jax.nn.sigmoid(gates[:, 0 * Hp:1 * Hp])
    f_t = jax.nn.sigmoid(gates[:, 1 * Hp:2 * Hp])
    o_t = jax.nn.sigmoid(gates[:, 2 * Hp:3 * Hp])
    g_t = jnp.tanh(gates[:, 3 * Hp:4 * Hp])

    c_new = f_t * c_ref[...] + i_t * g_t
    h_new = o_t * jnp.tanh(c_new)

    ct_ref[...] = c_new
    ht_ref[...] = h_new


def lstm_cell_forward(xt, ht_1, ct_1, packed):
    """Single LSTM cell step with pre-packed weights (see pack_lstm_params)."""
    B = xt.shape[0]
    I, H, Ip, Hp = packed["I"], packed["H"], packed["Ip"], packed["Hp"]
    Bp = _round_up(B, 8)
    cdt = packed["compute_dtype"]

    x = jnp.zeros((Bp, Ip), cdt).at[:B, :I].set(xt.astype(cdt))
    h = jnp.zeros((Bp, Hp), cdt).at[:B, :H].set(ht_1.astype(cdt))
    c = jnp.zeros((Bp, Hp), jnp.float32).at[:B, :H].set(ct_1.astype(jnp.float32))

    full = lambda shape: pl.BlockSpec(shape, lambda: (0,) * len(shape))
    ht, ct = pl.pallas_call(
        _lstm_step_kernel,
        out_shape=(jax.ShapeDtypeStruct((Bp, Hp), jnp.float32),
                   jax.ShapeDtypeStruct((Bp, Hp), jnp.float32)),
        in_specs=[full((Bp, Ip)),
                  full((Bp, Hp)),
                  full((Bp, Hp)),
                  full((Ip, 4 * Hp)),
                  full((Hp, 4 * Hp)),
                  full((1, 4 * Hp))],
        out_specs=(full((Bp, Hp)), full((Bp, Hp))),
        compiler_params=pltpu.CompilerParams(vmem_limit_bytes=_VMEM_LIMIT),
    )(x, h, c, packed["wx"], packed["wh"], packed["b"])

    return ht[:B, :H].astype(xt.dtype), ct[:B, :H].astype(xt.dtype)


# --------------------------------------------------------------------------- #
# Sequence path, phase 1: batched input projection  xw_t = x_t @ Wx + b
# (one big tiled MXU matmul over all T*B rows, embarrassingly parallel)
# --------------------------------------------------------------------------- #
def _xproj_kernel(x_ref, wx_ref, b_ref, xw_ref):
    xw_ref[...] = (jnp.dot(x_ref[...], wx_ref[...],
                           preferred_element_type=jnp.float32)
                   + b_ref[...])


# --------------------------------------------------------------------------- #
# Sequence path, phase 2: recurrence inside the kernel, Wh VMEM-resident over T
# --------------------------------------------------------------------------- #
def _lstm_recur_kernel(xw_ref, h0_ref, c0_ref, wh_ref, hs_ref, c_ref, h_sc, c_sc):
    t = pl.program_id(0)
    Hp = c_sc.shape[-1]

    @pl.when(t == 0)
    def _():
        h_sc[...] = h0_ref[...]
        c_sc[...] = c0_ref[...]

    # Only the recurrent half of the GEMM runs per step (K = Hp); the x half
    # plus bias was precomputed in phase 1 and is streamed in as xw_ref.
    gates = xw_ref[...] + jnp.dot(h_sc[...].astype(wh_ref.dtype), wh_ref[...],
                                  preferred_element_type=jnp.float32)

    i_t = jax.nn.sigmoid(gates[:, 0 * Hp:1 * Hp])
    f_t = jax.nn.sigmoid(gates[:, 1 * Hp:2 * Hp])
    o_t = jax.nn.sigmoid(gates[:, 2 * Hp:3 * Hp])
    g_t = jnp.tanh(gates[:, 3 * Hp:4 * Hp])

    c_new = f_t * c_sc[...] + i_t * g_t
    h_new = o_t * jnp.tanh(c_new)

    c_sc[...] = c_new
    h_sc[...] = h_new

    hs_ref[...] = h_new     # per-step hidden state output
    c_ref[...] = c_new      # resident output block; flushed to HBM once at grid end


def lstm_sequence_forward(xs, h0, c0, packed):
    """Apply the LSTM cell over xs[t] for t in [0, T).

    Phase 1 batches the input projection over all timesteps; phase 2 runs the
    recurrence with Wh resident in VMEM. Returns (all hidden states (T, B, H),
    final cell state (B, H))."""
    T, B, _ = xs.shape
    I, H, Ip, Hp = packed["I"], packed["H"], packed["Ip"], packed["Hp"]
    Bp = _round_up(B, 8)
    cdt = packed["compute_dtype"]

    # ---------------- phase 1: input projection for all T steps ----------------
    t_tile = max(1, min(T, 256 // Bp))        # rows per tile = t_tile * Bp (~256)
    T_pad = _round_up(T, t_tile)

    xs_p = jnp.zeros((T_pad, Bp, Ip), cdt).at[:T, :B, :I].set(xs.astype(cdt))
    x2 = xs_p.reshape(T_pad * Bp, Ip)
    TM = t_tile * Bp

    xw = pl.pallas_call(
        _xproj_kernel,
        out_shape=jax.ShapeDtypeStruct((T_pad * Bp, 4 * Hp), jnp.float32),
        grid=(T_pad // t_tile,),
        in_specs=[pl.BlockSpec((TM, Ip), lambda g: (g, 0)),          # x rows, streamed
                  pl.BlockSpec((Ip, 4 * Hp), lambda g: (0, 0)),      # Wx (resident)
                  pl.BlockSpec((1, 4 * Hp), lambda g: (0, 0))],      # bias (resident)
        out_specs=pl.BlockSpec((TM, 4 * Hp), lambda g: (g, 0)),
        compiler_params=pltpu.CompilerParams(
            dimension_semantics=("parallel",),
            vmem_limit_bytes=_VMEM_LIMIT,
        ),
    )(x2, packed["wx"], packed["b"])
    xw = xw.reshape(T_pad, Bp, 4 * Hp)

    # ---------------- phase 2: serial recurrence over T ----------------
    h0_p = jnp.zeros((Bp, Hp), jnp.float32).at[:B, :H].set(h0.astype(jnp.float32))
    c0_p = jnp.zeros((Bp, Hp), jnp.float32).at[:B, :H].set(c0.astype(jnp.float32))

    hs, c_fin = pl.pallas_call(
        _lstm_recur_kernel,
        out_shape=(jax.ShapeDtypeStruct((T, Bp, Hp), jnp.float32),
                   jax.ShapeDtypeStruct((Bp, Hp), jnp.float32)),
        grid=(T,),
        in_specs=[
            pl.BlockSpec((None, Bp, 4 * Hp), lambda t: (t, 0, 0)),   # xw_t, streamed
            pl.BlockSpec((Bp, Hp), lambda t: (0, 0)),                # h0 (resident)
            pl.BlockSpec((Bp, Hp), lambda t: (0, 0)),                # c0 (resident)
            pl.BlockSpec((Hp, 4 * Hp), lambda t: (0, 0)),            # Wh (resident)
        ],
        out_specs=(
            pl.BlockSpec((None, Bp, Hp), lambda t: (t, 0, 0)),       # h_t per step
            pl.BlockSpec((Bp, Hp), lambda t: (0, 0)),                # final c
        ),
        scratch_shapes=[
            pltpu.VMEM((Bp, Hp), jnp.float32),       # h state carry
            pltpu.VMEM((Bp, Hp), jnp.float32),       # c state carry
        ],
        compiler_params=pltpu.CompilerParams(
            dimension_semantics=("arbitrary",),      # time axis is a true recurrence
            vmem_limit_bytes=_VMEM_LIMIT,
        ),
    )(xw, h0_p, c0_p, packed["wh"])

    return hs[:, :B, :H].astype(xs.dtype), c_fin[:B, :H].astype(xs.dtype)


# --------------------------------------------------------------------------- #
# Pure-JAX reference (matches the PyTorch module exactly) and a tiny test
# --------------------------------------------------------------------------- #
def _ref_forward(xt, ht_1, ct_1, p):
    lin = lambda x, W, b=None: x @ W.T + (0.0 if b is None else b)
    it = jax.nn.sigmoid(lin(xt, p["Wxi"], p["bxi"]) + lin(ht_1, p["Whi"]))
    ft = jax.nn.sigmoid(lin(xt, p["Wxf"], p["bxf"]) + lin(ht_1, p["Whf"]))
    ot = jax.nn.sigmoid(lin(xt, p["Wxo"], p["bxo"]) + lin(ht_1, p["Who"]))
    ct = ft * ct_1 + it * jnp.tanh(lin(xt, p["Wxc"], p["bxc"]) + lin(ht_1, p["Whc"]))
    ht = ot * jnp.tanh(ct)
    return ht, ct


def _ref_sequence(xs, h0, c0, p):
    h, c = h0, c0
    hs = []
    for t in range(xs.shape[0]):
        h, c = _ref_forward(xs[t], h, c, p)
        hs.append(h)
    return jnp.stack(hs, axis=0), c


def _init_params(key, input_num, hidden_num):
    names = [
        ("Wxi", (hidden_num, input_num)), ("bxi", (hidden_num,)),
        ("Wxf", (hidden_num, input_num)), ("bxf", (hidden_num,)),
        ("Wxc", (hidden_num, input_num)), ("bxc", (hidden_num,)),
        ("Wxo", (hidden_num, input_num)), ("bxo", (hidden_num,)),
        ("Whi", (hidden_num, hidden_num)),
        ("Whf", (hidden_num, hidden_num)),
        ("Whc", (hidden_num, hidden_num)),
        ("Who", (hidden_num, hidden_num)),
    ]
    params = {}
    keys = jax.random.split(key, len(names))
    for k, (name, shape) in zip(keys, names):
        fan_in = input_num if name[1] == "x" else hidden_num
        bound = 1.0 / jnp.sqrt(jnp.float32(fan_in))
        params[name] = jax.random.uniform(
            k, shape, dtype=jnp.float32, minval=-bound, maxval=bound
        )
    return params


if __name__ == "__main__":
    B, input_num, hidden_num, T = 8, 16, 32, 6
    key = jax.random.PRNGKey(0)
    kx, kh, kc, kp, ks = jax.random.split(key, 5)

    xt = jax.random.normal(kx, (B, input_num), dtype=jnp.float32)
    ht_1 = jax.random.normal(kh, (B, hidden_num), dtype=jnp.float32)
    ct_1 = jax.random.normal(kc, (B, hidden_num), dtype=jnp.float32)
    xs = jax.random.normal(ks, (T, B, input_num), dtype=jnp.float32)
    params = _init_params(kp, input_num, hidden_num)

    packed = pack_lstm_params(params)   # one-time packing (bf16, lane-aligned)

    # Single-step (module-equivalent forward).
    ht, ct = lstm_cell_forward(xt, ht_1, ct_1, packed)
    jax.block_until_ready((ht, ct))
    ht_ref, ct_ref = _ref_forward(xt, ht_1, ct_1, params)
    assert jnp.allclose(ht, ht_ref, atol=2e-2, rtol=2e-2), "ht mismatch"
    assert jnp.allclose(ct, ct_ref, atol=2e-2, rtol=2e-2), "ct mismatch"

    # Two-phase sequence path (batched input projection + in-kernel recurrence).
    hs, c_fin = lstm_sequence_forward(xs, ht_1, ct_1, packed)
    jax.block_until_ready((hs, c_fin))
    hs_ref, c_fin_ref = _ref_sequence(xs, ht_1, ct_1, params)
    assert jnp.allclose(hs, hs_ref, atol=5e-2, rtol=5e-2), "sequence h mismatch"
    assert jnp.allclose(c_fin, c_fin_ref, atol=5e-2, rtol=5e-2), "sequence c mismatch"

    print("KERNEL_OK")
</pallas_src>

<mosaic_0001>
module attributes {stable_mosaic.version = 11 : i64} {
  func.func @_lstm_step_kernel(%arg0: memref<8x128xbf16, #tpu.memory_space<vmem>>, %arg1: memref<8x128xbf16, #tpu.memory_space<vmem>>, %arg2: memref<8x128xf32, #tpu.memory_space<vmem>>, %arg3: memref<128x512xbf16, #tpu.memory_space<vmem>>, %arg4: memref<128x512xbf16, #tpu.memory_space<vmem>>, %arg5: memref<1x512xf32, #tpu.memory_space<vmem>>, %arg6: memref<8x128xf32, #tpu.memory_space<vmem>>, %arg7: memref<8x128xf32, #tpu.memory_space<vmem>>) attributes {dimension_semantics = [], scalar_prefetch = 0 : i64, scratch_operands = 0 : i64, tpu.core_type = #tpu.core_type<tc>} {
    %c0 = arith.constant 0 : index
    %c0_0 = arith.constant 0 : index
    %0 = vector.load %arg0[%c0, %c0_0] : memref<8x128xbf16, #tpu.memory_space<vmem>>, vector<8x128xbf16>
    %c0_1 = arith.constant 0 : index
    %c0_2 = arith.constant 0 : index
    %1 = vector.load %arg3[%c0_1, %c0_2] : memref<128x512xbf16, #tpu.memory_space<vmem>>, vector<128x512xbf16>
    %cst = arith.constant dense<0.000000e+00> : vector<8x512xf32>
    %2 = tpu.matmul %0, %1, %cst {dimension_numbers = #tpu.dot_dimension_numbers<[1], [0], [0], [1], [0, 0, 1, 1], [], []>} : vector<8x128xbf16>, vector<128x512xbf16>, vector<8x512xf32> -> vector<8x512xf32>
    %c0_3 = arith.constant 0 : index
    %c0_4 = arith.constant 0 : index
    %3 = vector.load %arg1[%c0_3, %c0_4] : memref<8x128xbf16, #tpu.memory_space<vmem>>, vector<8x128xbf16>
    %c0_5 = arith.constant 0 : index
    %c0_6 = arith.constant 0 : index
    %4 = vector.load %arg4[%c0_5, %c0_6] : memref<128x512xbf16, #tpu.memory_space<vmem>>, vector<128x512xbf16>
    %cst_7 = arith.constant dense<0.000000e+00> : vector<8x512xf32>
    %5 = tpu.matmul %3, %4, %cst_7 {dimension_numbers = #tpu.dot_dimension_numbers<[1], [0], [0], [1], [0, 0, 1, 1], [], []>} : vector<8x128xbf16>, vector<128x512xbf16>, vector<8x512xf32> -> vector<8x512xf32>
    %6 = arith.addf %2, %5 : vector<8x512xf32>
    %c0_8 = arith.constant 0 : index
    %c0_9 = arith.constant 0 : index
    %7 = vector.load %arg5[%c0_8, %c0_9] : memref<1x512xf32, #tpu.memory_space<vmem>>, vector<1x512xf32>
    %8 = vector.broadcast %7 : vector<1x512xf32> to vector<8x512xf32>
    %9 = arith.addf %6, %8 : vector<8x512xf32>
    %10 = vector.extract_strided_slice %9 {offsets = [0, 0], sizes = [8, 128], strides = [1, 1]} : vector<8x512xf32> to vector<8x128xf32>
    %11 = arith.negf %10 : vector<8x128xf32>
    %12 = math.exp %11 : vector<8x128xf32>
    %cst_10 = arith.constant 1.000000e+00 : f32
    %13 = vector.broadcast %cst_10 : f32 to vector<8x128xf32>
    %14 = arith.addf %13, %12 : vector<8x128xf32>
    %15 = arith.divf %13, %14 : vector<8x128xf32>
    %16 = vector.extract_strided_slice %9 {offsets = [0, 128], sizes = [8, 128], strides = [1, 1]} : vector<8x512xf32> to vector<8x128xf32>
    %17 = arith.negf %16 : vector<8x128xf32>
    %18 = math.exp %17 : vector<8x128xf32>
    %cst_11 = arith.constant 1.000000e+00 : f32
    %19 = vector.broadcast %cst_11 : f32 to vector<8x128xf32>
    %20 = arith.addf %19, %18 : vector<8x128xf32>
    %21 = arith.divf %19, %20 : vector<8x128xf32>
    %22 = vector.extract_strided_slice %9 {offsets = [0, 256], sizes = [8, 128], strides = [1, 1]} : vector<8x512xf32> to vector<8x128xf32>
    %23 = arith.negf %22 : vector<8x128xf32>
    %24 = math.exp %23 : vector<8x128xf32>
    %cst_12 = arith.constant 1.000000e+00 : f32
    %25 = vector.broadcast %cst_12 : f32 to vector<8x128xf32>
    %26 = arith.addf %25, %24 : vector<8x128xf32>
    %27 = arith.divf %25, %26 : vector<8x128xf32>
    %28 = vector.extract_strided_slice %9 {offsets = [0, 384], sizes = [8, 128], strides = [1, 1]} : vector<8x512xf32> to vector<8x128xf32>
    %29 = math.tanh %28 : vector<8x128xf32>
    %c0_13 = arith.constant 0 : index
    %c0_14 = arith.constant 0 : index
    %30 = vector.load %arg2[%c0_13, %c0_14] : memref<8x128xf32, #tpu.memory_space<vmem>>, vector<8x128xf32>
    %31 = arith.mulf %21, %30 : vector<8x128xf32>
    %32 = arith.mulf %15, %29 : vector<8x128xf32>
    %33 = arith.addf %31, %32 : vector<8x128xf32>
    %34 = math.tanh %33 : vector<8x128xf32>
    %35 = arith.mulf %27, %34 : vector<8x128xf32>
    %c0_15 = arith.constant 0 : index
    %c0_16 = arith.constant 0 : index
    %36 = vector.load %arg7[%c0_15, %c0_16] : memref<8x128xf32, #tpu.memory_space<vmem>>, vector<8x128xf32>
    tpu.vector_store %arg7[%c0_15, %c0_16], %33 {strides = array<i32>} : memref<8x128xf32, #tpu.memory_space<vmem>>, vector<8x128xf32>,
    %c0_17 = arith.constant 0 : index
    %c0_18 = arith.constant 0 : index
    %37 = vector.load %arg6[%c0_17, %c0_18] : memref<8x128xf32, #tpu.memory_space<vmem>>, vector<8x128xf32>
    tpu.vector_store %arg6[%c0_17, %c0_18], %35 {strides = array<i32>} : memref<8x128xf32, #tpu.memory_space<vmem>>, vector<8x128xf32>,
    return
  }
}

</mosaic_0001>

<bundles_post_ra>
// kernel: tpu_custom_call.1
= control target key start
LH: loop header
LB: loop body
LE: loop exit
PB: predicated region body
PF: predicated region fallthrough
CT: control target
= control target key end

     0   :  { %13 = vsyncpa [#allocation3], 0  ;;  %s1279_s0 = inlined_call_operand.hbm [shape: bf16[8,128], index: 0, kind: input, shape index: {}]   ;;  %s1280_s1 = inlined_call_operand.hbm [shape: bf16[8,128], index: 1, kind: input, shape index: {}]   ;;  %s1281_s2 = inlined_call_operand.hbm [shape: f32[8,128], index: 2, kind: input, shape index: {}]   ;;  %s1282_s3 = inlined_call_operand.hbm [shape: bf16[128,512], index: 3, kind: input, shape index: {}]   ;;  %s1283_s4 = inlined_call_operand.hbm [shape: bf16[128,512], index: 4, kind: input, shape index: {}]   ;;  %s1284_s5 = inlined_call_operand.hbm [shape: f32[1,512], index: 5, kind: input, shape index: {}]   ;;  %s1285_s6 = inlined_call_operand.hbm [shape: f32[8,128], index: 6, kind: output, shape index: {0}]   ;;  %s1286_s7 = inlined_call_operand.hbm [shape: f32[8,128], index: 7, kind: output, shape index: {1}]  }
   0x1   :  { %14 = vsyncpa [#allocation6], 0 }
   0x2   :  { %15 = vsyncpa [#allocation9], 0 }
   0x3   :  { %16 = vsyncpa [#allocation12], 0 }
   0x4   :  { %17 = vsyncpa [#allocation4], 0 }
   0x5   :  { %18 = vsyncpa [#allocation15], 0  ;;  %s1115_s24 = smov [#allocation5]   ;;  %s1116_s26 = smov [#allocation8]  }
   0x6   :  { %s35_s25 = sshll.u32 %s1115_s24, 4  ;;  %s54_s27 = sshll.u32 %s1116_s26, 4  ;;  %s36_s25 = int_to_ptr.vmem [resolvable:$true] %s35_s25  ;;  %s1166_s27 = int_to_ptr.vmem [resolvable:$true] %s54_s27 }
   0x7   :  { %s927_s30 = scalar_lea.hbm %s1280_s1, 64 }
   0x8   :  { %p928_p0 = scmp.ne.s32.totalorder %s1280_s1, %s927_s30  ;;  %p931_p1 = scmp.lt.u32.totalorder %s927_s30, %s1280_s1 }
   0xa   :  { %p933_p2 = pnand %p931_p1, %p928_p0 }
   0xc   :  { %936 = shalt.err (!%p933_p2)
}
   0xd   :  { %s937_s12 = scalar_lea.vmem %s36_s25, 64  ;;  %p942_p4 = scmp.lt.s32.totalorder %s36_s25, %s36_s25 }
   0xe   :  { %p938_p3 = scmp.ne.s32.totalorder %s36_s25, %s937_s12  ;;  %p943_p5 = scmp.lt.s32.totalorder %s937_s12, %s937_s12 }
  0x10   :  { %p944_p6 = por %p943_p5, %p942_p4 }
  0x12   :  { %p945_p7 = pnand %p944_p6, %p938_p3 }
  0x14   :  { %948 = shalt.err (!%p945_p7)
}
  0x15   :  { %38 = dma.hbm_to_vmem [thread:$0]  %s1280_s1, 64, %s36_s25, [#allocation6]  }
  0x16   :  { %s949_s17 = scalar_lea.hbm %s1282_s3, 4096 }
  0x17   :  { %p950_p8 = scmp.ne.s32.totalorder %s1282_s3, %s949_s17  ;;  %p953_p9 = scmp.lt.u32.totalorder %s949_s17, %s1282_s3 }
  0x19   :  { %p955_p10 = pnand %p953_p9, %p950_p8 }
  0x1b   :  { %958 = shalt.err (!%p955_p10)
}
  0x1c   :  { %s959_s22 = scalar_lea.vmem %s1166_s27, 4096  ;;  %p964_p12 = scmp.lt.s32.totalorder %s1166_s27, %s1166_s27 }
  0x1d   :  { %p960_p11 = scmp.ne.s32.totalorder %s1166_s27, %s959_s22  ;;  %p965_p13 = scmp.lt.s32.totalorder %s959_s22, %s959_s22 }
  0x1f   :  { %p966_p0 = por %p965_p13, %p964_p12 }
  0x21   :  { %p967_p1 = pnand %p966_p0, %p960_p11 }
  0x23   :  { %970 = shalt.err (!%p967_p1)
}
  0x24   :  { %s1117_s1 = smov 256   ;;  %s1118_s23 = smov 16  }
  0x25   :  { %60 = dma.hbm_to_vmem [thread:$0]  %s1282_s3, 4096, %s1166_s27, [#allocation9], %s1117_s1, %s1117_s1, %s1118_s23  }
  0x26   :  { %s1119_s26 = smov [#allocation2]   ;;  %s1120_s29 = smov [#allocation7]  }
  0x27   :  { %s25_s28 = sshll.u32 %s1119_s26, 4  ;;  %s45_s30 = sshll.u32 %s1120_s29, 4  ;;  %s26_s28 = int_to_ptr.vmem [resolvable:$true] %s25_s28  ;;  %s46_s30 = int_to_ptr.vmem [resolvable:$true] %s45_s30 }
  0x28   :  { %s971_s10 = scalar_lea.hbm %s1279_s0, 64 }
  0x29   :  { %p972_p2 = scmp.ne.s32.totalorder %s1279_s0, %s971_s10  ;;  %p975_p3 = scmp.lt.u32.totalorder %s971_s10, %s1279_s0 }
  0x2b   :  { %p977_p4 = pnand %p975_p3, %p972_p2 }
  0x2d   :  { %980 = shalt.err (!%p977_p4)
}
  0x2e   :  { %s981_s3 = scalar_lea.vmem %s26_s28, 64  ;;  %p986_p6 = scmp.lt.s32.totalorder %s26_s28, %s26_s28 }
  0x2f   :  { %p982_p5 = scmp.ne.s32.totalorder %s26_s28, %s981_s3  ;;  %p987_p7 = scmp.lt.s32.totalorder %s981_s3, %s981_s3 }
  0x31   :  { %p988_p8 = por %p987_p7, %p986_p6 }
  0x33   :  { %p989_p9 = pnand %p988_p8, %p982_p5 }
  0x35   :  { %992 = shalt.err (!%p989_p9)
}
  0x36   :  { %28 = dma.hbm_to_vmem [thread:$0]  %s1279_s0, 64, %s26_s28, [#allocation3]  }
  0x37   :  { %s993_s18 = scalar_lea.hbm %s1281_s2, 128 }
  0x38   :  { %p994_p10 = scmp.ne.s32.totalorder %s1281_s2, %s993_s18  ;;  %p997_p11 = scmp.lt.u32.totalorder %s993_s18, %s1281_s2 }
  0x3a   :  { %p999_p12 = pnand %p997_p11, %p994_p10 }
  0x3c   :  { %1002 = shalt.err (!%p999_p12)
}
  0x3d   :  { %s1003_s24 = scalar_lea.vmem %s46_s30, 128  ;;  %p1008_p0 = scmp.lt.s32.totalorder %s46_s30, %s46_s30 }
  0x3e   :  { %p1004_p13 = scmp.ne.s32.totalorder %s46_s30, %s1003_s24  ;;  %p1009_p1 = scmp.lt.s32.totalorder %s1003_s24, %s1003_s24 }
  0x40   :  { %p1010_p2 = por %p1009_p1, %p1008_p0 }
  0x42   :  { %p1011_p3 = pnand %p1010_p2, %p1004_p13 }
  0x44   :  { %1014 = shalt.err (!%p1011_p3)
}
  0x45   :  { %48 = dma.hbm_to_vmem [thread:$0]  %s1281_s2, 128, %s46_s30, [#allocation6]  }
  0x46   :  { %s1121_s26 = smov [#allocation10]   ;;  %s1122_s29 = smov [#allocation11]  }
  0x47   :  { %s66_s28 = sshll.u32 %s1121_s26, 4  ;;  %s79_s8 = sshll.u32 %s1122_s29, 4  ;;  %s67_s28 = int_to_ptr.vmem [resolvable:$true] %s66_s28  ;;  %s80_s8 = int_to_ptr.vmem [resolvable:$true] %s79_s8 }
  0x48   :  { %s1015_s11 = scalar_lea.hbm %s1283_s4, 4096 }
  0x49   :  { %p1016_p4 = scmp.ne.s32.totalorder %s1283_s4, %s1015_s11  ;;  %p1019_p5 = scmp.lt.u32.totalorder %s1015_s11, %s1283_s4 }
  0x4b   :  { %p1021_p6 = pnand %p1019_p5, %p1016_p4 }
  0x4d   :  { %1024 = shalt.err (!%p1021_p6)
}
  0x4e   :  { %s1025_s2 = scalar_lea.vmem %s67_s28, 4096  ;;  %p1030_p8 = scmp.lt.s32.totalorder %s67_s28, %s67_s28 }
  0x4f   :  { %p1026_p7 = scmp.ne.s32.totalorder %s67_s28, %s1025_s2  ;;  %p1031_p9 = scmp.lt.s32.totalorder %s1025_s2, %s1025_s2 }
  0x51   :  { %p1032_p10 = por %p1031_p9, %p1030_p8 }
  0x53   :  { %p1033_p11 = pnand %p1032_p10, %p1026_p7 }
  0x55   :  { %1036 = shalt.err (!%p1033_p11)
}
  0x56   :  { %72 = dma.hbm_to_vmem [thread:$0]  %s1283_s4, 4096, %s67_s28, [#allocation9], %s1117_s1, %s1117_s1, %s1118_s23  }
  0x57   :  { %s1037_s17 = scalar_lea.hbm %s1284_s5, 64 }
  0x58   :  { %p1038_p12 = scmp.ne.s32.totalorder %s1284_s5, %s1037_s17  ;;  %p1041_p13 = scmp.lt.u32.totalorder %s1037_s17, %s1284_s5 }
  0x5a   :  { %p1043_p0 = pnand %p1041_p13, %p1038_p12 }
  0x5c   :  { %1046 = shalt.err (!%p1043_p0)
}
  0x5d   :  { %s1047_s22 = scalar_lea.vmem %s80_s8, 64  ;;  %p1052_p2 = scmp.lt.s32.totalorder %s80_s8, %s80_s8 }
  0x5e   :  { %p1048_p1 = scmp.ne.s32.totalorder %s80_s8, %s1047_s22  ;;  %p1053_p3 = scmp.lt.s32.totalorder %s1047_s22, %s1047_s22 }
  0x60   :  { %p1054_p4 = por %p1053_p3, %p1052_p2 }
  0x62   :  { %p1055_p5 = pnand %p1054_p4, %p1048_p1 }
  0x64   :  { %1058 = shalt.err (!%p1055_p5)
}
  0x65   :  { %82 = dma.hbm_to_vmem [thread:$0]  %s1284_s5, 64, %s80_s8, [#allocation12]  }
  0x66   :  { %1103 = dma.done.wait [#allocation3], 64  }
  0x67   :  { %1104 = vsyncadd [#allocation3], 4294967232 }
  0x68   :  { %1105 = dma.done.wait [#allocation6], 192  }
  0x69   :  { %1106 = vsyncadd [#allocation6], 4294967104 }
  0x6a   :  { %1107 = dma.done.wait [#allocation9], 8192  }
  0x6b   :  { %1108 = vsyncadd [#allocation9], 4294959104 }
  0x6c   :  { %1109 = dma.done.wait [#allocation12], 64  }
  0x6d   :  { %1110 = vsyncadd [#allocation12], 4294967232  ;;  %v1123_v0 = vmov 0   ;;  %v815_v1 = vld [vmem:[#allocation10 + $0x4] ss:$16 sps:$4 sm:$0xff]   ;;  %s1124_s5 = smov [#allocation14]  }
  0x6e   :  { %360 = vmatprep.mubr.bf16.mxu0 %v1123_v0  ;;  %401 = vmatprep.mubr.bf16.mxu1 %v1123_v0  ;;  %v817_v2 = vld [vmem:[#allocation10 + $0xc] ss:$16 sps:$4 sm:$0xff]   ;;  %v819_v3 = vld [vmem:[#allocation10] ss:$16 sps:$4 sm:$0xff]   ;;  %v820_v4 = vld [vmem:[#allocation10 + $0x8] ss:$16 sps:$4 sm:$0xff]  }
  0x6f   :  { %328 = vmatprep.subr.bf16.mxu0 %v815_v1  ;;  %369 = vmatprep.subr.bf16.mxu1 %v817_v2  ;;  %v821_v5 = vld [vmem:[#allocation10 + $0x24] ss:$16 sps:$4 sm:$0xff]   ;;  %v823_v6 = vld [vmem:[#allocation10 + $0x2c] ss:$16 sps:$4 sm:$0xff]   ;;  %v825_v7 = vld [vmem:[#allocation10 + $0x20] ss:$16 sps:$4 sm:$0xff]  }
  0x70   :  { %329 = vmatpush1.bf16.msra.mxu0 %v819_v3  ;;  %370 = vmatpush1.bf16.msra.mxu1 %v820_v4  ;;  %v826_v8 = vld [vmem:[#allocation10 + $0x28] ss:$16 sps:$4 sm:$0xff]   ;;  %v827_v9 = vld [vmem:[#allocation10 + $0x44] ss:$16 sps:$4 sm:$0xff]   ;;  %v829_v10 = vld [vmem:[#allocation10 + $0x4c] ss:$16 sps:$4 sm:$0xff]  }
  0x71   :  { %330 = vmatprep.subr.bf16.mxu0 %v821_v5  ;;  %371 = vmatprep.subr.bf16.mxu1 %v823_v6  ;;  %v831_v11 = vld [vmem:[#allocation10 + $0x40] ss:$16 sps:$4 sm:$0xff]   ;;  %v832_v12 = vld [vmem:[#allocation10 + $0x48] ss:$16 sps:$4 sm:$0xff]   ;;  %v833_v13 = vld [vmem:[#allocation10 + $0x64] ss:$16 sps:$4 sm:$0xff]  }
  0x72   :  { %v835_v14 = vld [vmem:[#allocation10 + $0x6c] ss:$16 sps:$4 sm:$0xff]   ;;  %v837_v15 = vld [vmem:[#allocation10 + $0x60] ss:$16 sps:$4 sm:$0xff]   ;;  %v838_v16 = vld [vmem:[#allocation10 + $0x68] ss:$16 sps:$4 sm:$0xff]  }
  0x73   :  { %v839_v17 = vld [vmem:[#allocation10 + $0x84] ss:$16 sps:$4 sm:$0xff]   ;;  %v841_v18 = vld [vmem:[#allocation10 + $0x8c] ss:$16 sps:$4 sm:$0xff]   ;;  %v843_v19 = vld [vmem:[#allocation10 + $0x80] ss:$16 sps:$4 sm:$0xff]  }
  0x74   :  { %331 = vmatpush1.bf16.msra.mxu0 %v825_v7  ;;  %372 = vmatpush1.bf16.msra.mxu1 %v826_v8  ;;  %v844_v20 = vld [vmem:[#allocation10 + $0x88] ss:$16 sps:$4 sm:$0xff]   ;;  %v845_v21 = vld [vmem:[#allocation10 + $0xa4] ss:$16 sps:$4 sm:$0xff]   ;;  %v847_v22 = vld [vmem:[#allocation10 + $0xac] ss:$16 sps:$4 sm:$0xff]  }
  0x75   :  { %332 = vmatprep.subr.bf16.mxu0 %v827_v9  ;;  %373 = vmatprep.subr.bf16.mxu1 %v829_v10  ;;  %v849_v23 = vld [vmem:[#allocation10 + $0xa0] ss:$16 sps:$4 sm:$0xff]   ;;  %v850_v24 = vld [vmem:[#allocation10 + $0xa8] ss:$16 sps:$4 sm:$0xff]   ;;  %v851_v25 = vld [vmem:[#allocation10 + $0xc4] ss:$16 sps:$4 sm:$0xff]  }
  0x76   :  { %v853_v26 = vld [vmem:[#allocation10 + $0xcc] ss:$16 sps:$4 sm:$0xff]   ;;  %v855_v27 = vld [vmem:[#allocation10 + $0xc0] ss:$16 sps:$4 sm:$0xff]   ;;  %v856_v28 = vld [vmem:[#allocation10 + $0xc8] ss:$16 sps:$4 sm:$0xff]  }
  0x77   :  { %v857_v29 = vld [vmem:[#allocation10 + $0xe4] ss:$16 sps:$4 sm:$0xff]   ;;  %v859_v30 = vld [vmem:[#allocation10 + $0xec] ss:$16 sps:$4 sm:$0xff]   ;;  %v861_v31 = vld [vmem:[#allocation10 + $0xe0] ss:$16 sps:$4 sm:$0xff]  }
  0x78   :  { %333 = vmatpush1.bf16.msra.mxu0 %v831_v11  ;;  %374 = vmatpush1.bf16.msra.mxu1 %v832_v12  ;;  %v862_v32 = vld [vmem:[#allocation10 + $0xe8] ss:$16 sps:$4 sm:$0xff]   ;;  %v865_v33 = vld [vmem:[#allocation8 + $0x4] ss:$16 sps:$4 sm:$0xff]   ;;  %v868_v34 = vld [vmem:[#allocation8 + $0xc] ss:$16 sps:$4 sm:$0xff]   ;;  %v654_v11 = vlaneseq }
  0x79   :  { %334 = vmatprep.subr.bf16.mxu0 %v833_v13  ;;  %375 = vmatprep.subr.bf16.mxu1 %v835_v14  ;;  %v135_v35 = vld [vmem:[#allocation5] sm:$0xf]  ;;  %v863_v36 = vld [vmem:[#allocation8] ss:$16 sps:$4 sm:$0xff]   ;;  %v866_v37 = vld [vmem:[#allocation8 + $0x8] ss:$16 sps:$4 sm:$0xff]  }
  0x7a   :  { %v871_v38 = vld [vmem:[#allocation8 + $0x24] ss:$16 sps:$4 sm:$0xff]   ;;  %v874_v39 = vld [vmem:[#allocation8 + $0x2c] ss:$16 sps:$4 sm:$0xff]   ;;  %v869_v40 = vld [vmem:[#allocation8 + $0x20] ss:$16 sps:$4 sm:$0xff]  }
  0x7b   :  { %v872_v41 = vld [vmem:[#allocation8 + $0x28] ss:$16 sps:$4 sm:$0xff]   ;;  %v877_v42 = vld [vmem:[#allocation8 + $0x44] ss:$16 sps:$4 sm:$0xff]   ;;  %v880_v43 = vld [vmem:[#allocation8 + $0x4c] ss:$16 sps:$4 sm:$0xff]  }
  0x7c   :  { %335 = vmatpush1.bf16.msra.mxu0 %v837_v15  ;;  %376 = vmatpush1.bf16.msra.mxu1 %v838_v16  ;;  %v875_v44 = vld [vmem:[#allocation8 + $0x40] ss:$16 sps:$4 sm:$0xff]   ;;  %v878_v45 = vld [vmem:[#allocation8 + $0x48] ss:$16 sps:$4 sm:$0xff]   ;;  %v883_v46 = vld [vmem:[#allocation8 + $0x64] ss:$16 sps:$4 sm:$0xff]  }
  0x7d   :  { %336 = vmatprep.subr.bf16.mxu0 %v839_v17  ;;  %377 = vmatprep.subr.bf16.mxu1 %v841_v18  ;;  %v886_v47 = vld [vmem:[#allocation8 + $0x6c] ss:$16 sps:$4 sm:$0xff]   ;;  %v881_v48 = vld [vmem:[#allocation8 + $0x60] ss:$16 sps:$4 sm:$0xff]   ;;  %v884_v49 = vld [vmem:[#allocation8 + $0x68] ss:$16 sps:$4 sm:$0xff]  }
  0x7e   :  { %v889_v50 = vld [vmem:[#allocation8 + $0x84] ss:$16 sps:$4 sm:$0xff]   ;;  %v892_v51 = vld [vmem:[#allocation8 + $0x8c] ss:$16 sps:$4 sm:$0xff]   ;;  %v887_v52 = vld [vmem:[#allocation8 + $0x80] ss:$16 sps:$4 sm:$0xff]  }
  0x7f   :  { %v890_v53 = vld [vmem:[#allocation8 + $0x88] ss:$16 sps:$4 sm:$0xff]   ;;  %v895_v54 = vld [vmem:[#allocation8 + $0xa4] ss:$16 sps:$4 sm:$0xff]   ;;  %v898_v55 = vld [vmem:[#allocation8 + $0xac] ss:$16 sps:$4 sm:$0xff]  }
  0x80   :  { %337 = vmatpush1.bf16.msra.mxu0 %v843_v19  ;;  %378 = vmatpush1.bf16.msra.mxu1 %v844_v20  ;;  %v893_v56 = vld [vmem:[#allocation8 + $0xa0] ss:$16 sps:$4 sm:$0xff]   ;;  %v896_v57 = vld [vmem:[#allocation8 + $0xa8] ss:$16 sps:$4 sm:$0xff]   ;;  %v901_v58 = vld [vmem:[#allocation8 + $0xc4] ss:$16 sps:$4 sm:$0xff]  }
  0x81   :  { %338 = vmatprep.subr.bf16.mxu0 %v845_v21  ;;  %379 = vmatprep.subr.bf16.mxu1 %v847_v22  ;;  %v904_v59 = vld [vmem:[#allocation8 + $0xcc] ss:$16 sps:$4 sm:$0xff]   ;;  %v899_v60 = vld [vmem:[#allocation8 + $0xc0] ss:$16 sps:$4 sm:$0xff]   ;;  %v902_v61 = vld [vmem:[#allocation8 + $0xc8] ss:$16 sps:$4 sm:$0xff]  }
  0x82   :  { %v907_v62 = vld [vmem:[#allocation8 + $0xe4] ss:$16 sps:$4 sm:$0xff]   ;;  %v910_v63 = vld [vmem:[#allocation8 + $0xec] ss:$16 sps:$4 sm:$0xff]   ;;  %v908_v1 = vld [vmem:[#allocation8 + $0xe8] ss:$16 sps:$4 sm:$0xff]  }
  0x83   :  { %v102_v2 = vld [vmem:[#allocation2] sm:$0xf]  ;;  %v655_v12 = vshrl.u32 %v654_v11, 7  ;;  %v652_v14 = vld [vmem:[#allocation11] sm:$0xf]  ;;  %s721_s23 = sshll.u32 %s1124_s5, 4  ;;  %s722_s23 = int_to_ptr.vmem [resolvable:$true] %s721_s23 }
  0x84   :  { %339 = vmatpush1.bf16.msra.mxu0 %v849_v23  ;;  %380 = vmatpush1.bf16.msra.mxu1 %v850_v24  ;;  %s1059_s24 = scalar_lea.vmem %s722_s23, 128  ;;  %p1064_p7 = scmp.lt.s32.totalorder %s722_s23, %s722_s23 }
  0x85   :  { %340 = vmatprep.subr.bf16.mxu0 %v851_v25  ;;  %381 = vmatprep.subr.bf16.mxu1 %v853_v26  ;;  %v656_v13 = vsub.s32 0, %v655_v12  ;;  %v660_v15 = vsub.s32 1, %v655_v12  ;;  %p1060_p6 = scmp.ne.s32.totalorder %s722_s23, %s1059_s24  ;;  %p1065_p8 = scmp.lt.s32.totalorder %s1059_s24, %s1059_s24 }
  0x87   :  { %v657_v16 = vrot.slane %v652_v14, %v656_v13  ;;  %v661_v19 = vrot.slane %v652_v14, %v660_v15  ;;  %p1066_p9 = por %p1065_p8, %p1064_p7 }
  0x88   :  { %341 = vmatpush1.bf16.msra.mxu0 %v855_v27  ;;  %382 = vmatpush1.bf16.msra.mxu1 %v856_v28 }
  0x89   :  { %342 = vmatprep.subr.bf16.mxu0 %v857_v29  ;;  %383 = vmatprep.subr.bf16.mxu1 %v859_v30  ;;  %v664_v29 = vsub.s32 2, %v655_v12  ;;  %p1067_p10 = pnand %p1066_p9, %p1060_p6 }
  0x8c   :  { %343 = vmatpush1.bf16.msra.mxu0 %v861_v31  ;;  %384 = vmatpush1.bf16.msra.mxu1 %v862_v32 }
  0x8d   :  { %570 = vmatprep.subr.bf16.mxu0 %v865_v33  ;;  %611 = vmatprep.subr.bf16.mxu1 %v868_v34 }
  0x8f   :  { %361 = vmatmul.mubr.bf16.vlgmr.msra.gmra.mrb[0].mxu0 %v135_v35  ;;  %402 = vmatmul.mubr.bf16.vlgmr.msra.gmra.mrb[0].mxu1 %v135_v35  ;;  %v668_v35 = vsub.s32 3, %v655_v12 }
  0x90   :  { %571 = vmatpush1.bf16.msra.mxu0 %v863_v36  ;;  %612 = vmatpush1.bf16.msra.mxu1 %v866_v37  ;;  %v665_v36 = vrot.slane %v652_v14, %v664_v29 }
  0x91   :  { %572 = vmatprep.subr.bf16.mxu0 %v871_v38  ;;  %613 = vmatprep.subr.bf16.mxu1 %v874_v39  ;;  %v669_v37 = vrot.slane %v652_v14, %v668_v35 }
  0x92   :  { %602 = vmatprep.mubr.bf16.mxu0 %v1123_v0  ;;  %643 = vmatprep.mubr.bf16.mxu1 %v1123_v0  ;;  %v905_v0 = vld [vmem:[#allocation8 + $0xe0] ss:$16 sps:$4 sm:$0xff]  }
  0x94   :  { %573 = vmatpush1.bf16.msra.mxu0 %v869_v40  ;;  %614 = vmatpush1.bf16.msra.mxu1 %v872_v41 }
  0x95   :  { %574 = vmatprep.subr.bf16.mxu0 %v877_v42  ;;  %615 = vmatprep.subr.bf16.mxu1 %v880_v43 }
  0x98   :  { %575 = vmatpush1.bf16.msra.mxu0 %v875_v44  ;;  %616 = vmatpush1.bf16.msra.mxu1 %v878_v45 }
  0x99   :  { %576 = vmatprep.subr.bf16.mxu0 %v883_v46  ;;  %617 = vmatprep.subr.bf16.mxu1 %v886_v47 }
  0x9c   :  { %577 = vmatpush1.bf16.msra.mxu0 %v881_v48  ;;  %618 = vmatpush1.bf16.msra.mxu1 %v884_v49  ;;  %v697_v48 = vld [vmem:[#allocation7] sm:$0xff] }
  0x9d   :  { %578 = vmatprep.subr.bf16.mxu0 %v889_v50  ;;  %619 = vmatprep.subr.bf16.mxu1 %v892_v51 }
  0xa0   :  { %579 = vmatpush1.bf16.msra.mxu0 %v887_v52  ;;  %620 = vmatpush1.bf16.msra.mxu1 %v890_v53 }
  0xa1   :  { %580 = vmatprep.subr.bf16.mxu0 %v895_v54  ;;  %621 = vmatprep.subr.bf16.mxu1 %v898_v55 }
  0xa4   :  { %581 = vmatpush1.bf16.msra.mxu0 %v893_v56  ;;  %622 = vmatpush1.bf16.msra.mxu1 %v896_v57 }
  0xa5   :  { %582 = vmatprep.subr.bf16.mxu0 %v901_v58  ;;  %623 = vmatprep.subr.bf16.mxu1 %v904_v59 }
  0xa8   :  { %583 = vmatpush1.bf16.msra.mxu0 %v899_v60  ;;  %624 = vmatpush1.bf16.msra.mxu1 %v902_v61 }
  0xa9   :  { %584 = vmatprep.subr.bf16.mxu0 %v907_v62  ;;  %625 = vmatprep.subr.bf16.mxu1 %v910_v63 }
  0xac   :  { %585 = vmatpush1.bf16.msra.mxu0 %v905_v0  ;;  %626 = vmatpush1.bf16.msra.mxu1 %v908_v1 }
  0xaf   :  { %603 = vmatmul.mubr.bf16.vlgmr.msra.gmra.mrb[4].mxu0 %v102_v2  ;;  %644 = vmatmul.mubr.bf16.vlgmr.msra.gmra.mrb[4].mxu1 %v102_v2 }
 0x162   :  { %v362_v3 = vpop.f32.mrb[0].mxu0  ;;  %v403_v4 = vpop.f32.mrb[0].mxu1 }
 0x163   :  { %v364_v5 = vpop.f32.mrb[1].mxu0  ;;  %v405_v6 = vpop.f32.mrb[1].mxu1 }
 0x164   :  { %v366_v7 = vpop.f32.mrb[2].mxu0  ;;  %v407_v8 = vpop.f32.mrb[2].mxu1 }
 0x165   :  { %v367_v9 = vpop.f32.mrb[3].mxu0  ;;  %v408_v10 = vpop.f32.mrb[3].mxu1 }
 0x182   :  { %v604_v17 = vpop.f32.mrb[4].mxu0  ;;  %v645_v18 = vpop.f32.mrb[4].mxu1 }
 0x183   :  { %v605_v20 = vadd.f32 %v604_v17, %v362_v3  ;;  %v646_v21 = vadd.f32 %v645_v18, %v403_v4  ;;  %v606_v22 = vpop.f32.mrb[5].mxu0  ;;  %v647_v23 = vpop.f32.mrb[5].mxu1 }
 0x184   :  { %v607_v24 = vadd.f32 %v606_v22, %v364_v5  ;;  %v648_v25 = vadd.f32 %v647_v23, %v405_v6  ;;  %v608_v26 = vpop.f32.mrb[6].mxu0  ;;  %v649_v27 = vpop.f32.mrb[6].mxu1 }
 0x185   :  { %v674_v28 = vadd.f32 %v657_v16, %v605_v20  ;;  %v609_v30 = vpop.f32.mrb[7].mxu0  ;;  %v650_v31 = vpop.f32.mrb[7].mxu1  ;;  %v676_v38 = vadd.f32 %v665_v36, %v646_v21 }
 0x186   :  { %v675_v32 = vadd.f32 %v661_v19, %v607_v24  ;;  %v677_v39 = vadd.f32 %v669_v37, %v648_v25 }
 0x187   :  { %v801_v33 = vmul.f32 -1.442695, %v674_v28  ;;  %v803_v40 = vmul.f32 -1.442695, %v676_v38 }
 0x188   :  { %v802_v34 = vmul.f32 -1.442695, %v675_v32 }
 0x189   :  { %911 = vpow2.f32 %v801_v33 }
 0x18a   :  { %913 = vpow2.f32 %v802_v34 }
 0x18b   :  { %915 = vtanh.f32 %v677_v39 }
 0x18c   :  { %917 = vpow2.f32 %v803_v40 }
 0x193   :  { %v912_v41 = vpop.eup %911 }
 0x194   :  { %v681_v42 = vadd.f32 1.0, %v912_v41  ;;  %v914_v43 = vpop.eup %913 }
 0x195   :  { %v687_v44 = vadd.f32 1.0, %v914_v43  ;;  %v916_v45 = vpop.eup %915 }
 0x196   :  { %919 = vrcp.f32 %v681_v42  ;;  %v918_v46 = vpop.eup %917 }
 0x197   :  { %921 = vrcp.f32 %v687_v44  ;;  %v693_v51 = vadd.f32 1.0, %v918_v46 }
 0x199   :  { %923 = vrcp.f32 %v693_v51 }
 0x1a0   :  { %v920_v47 = vpop.eup %919 }
 0x1a1   :  { %v699_v49 = vmul.f32 %v920_v47, %v916_v45  ;;  %v922_v50 = vpop.eup %921 }
 0x1a2   :  { %v698_v52 = vmul.f32 %v922_v50, %v697_v48 }
 0x1a4   :  { %v700_v53 = vadd.f32 %v699_v49, %v698_v52 }
 0x1a6   :  { %703 = vst [vmem:[#allocation14] sm:$0xff] %v700_v53  ;;  %925 = vtanh.f32 %v700_v53 }
 0x1a7   :  { %1070 = shalt.err (!%p1067_p10)
}
 0x1a8   :  { %s1071_s26 = scalar_lea.hbm %s1286_s7, 128 }
 0x1a9   :  { %p1072_p11 = scmp.ne.s32.totalorder %s1286_s7, %s1071_s26  ;;  %p1075_p12 = scmp.lt.u32.totalorder %s1071_s26, %s1286_s7 }
 0x1ab   :  { %p1077_p13 = pnand %p1075_p12, %p1072_p11 }
 0x1ad   :  { %1080 = shalt.err (!%p1077_p13)
}
 0x1ae   :  { %724 = dma.vmem_to_hbm [thread:$0]  %s722_s23, 128, %s1286_s7, [#allocation15]   ;;  %v924_v54 = vpop.eup %923 }
 0x1af   :  { %s1125_s12 = smov [#allocation13]  }
 0x1b0   :  { %s711_s13 = sshll.u32 %s1125_s12, 4  ;;  %v926_v55 = vpop.eup %925  ;;  %s712_s13 = int_to_ptr.vmem [resolvable:$true] %s711_s13 }
 0x1b1   :  { %v702_v56 = vmul.f32 %v926_v55, %v924_v54  ;;  %s1081_s14 = scalar_lea.vmem %s712_s13, 128  ;;  %p1086_p1 = scmp.lt.s32.totalorder %s712_s13, %s712_s13 }
 0x1b2   :  { %p1082_p0 = scmp.ne.s32.totalorder %s712_s13, %s1081_s14  ;;  %p1087_p2 = scmp.lt.s32.totalorder %s1081_s14, %s1081_s14 }
 0x1b3   :  { %704 = vst [vmem:[#allocation13] sm:$0xff] %v702_v56 }
 0x1b4   :  { %p1088_p3 = por %p1087_p2, %p1086_p1 }
 0x1b6   :  { %p1089_p4 = pnand %p1088_p3, %p1082_p0 }
 0x1b8   :  { %1092 = shalt.err (!%p1089_p4)
}
 0x1b9   :  { %s1093_s30 = scalar_lea.hbm %s1285_s6, 128 }
 0x1ba   :  { %p1094_p5 = scmp.ne.s32.totalorder %s1285_s6, %s1093_s30  ;;  %p1097_p6 = scmp.lt.u32.totalorder %s1093_s30, %s1285_s6 }
 0x1bc   :  { %p1099_p7 = pnand %p1097_p6, %p1094_p5 }
 0x1be   :  { %1102 = shalt.err (!%p1099_p7)
}
 0x1bf   :  { %714 = dma.vmem_to_hbm [thread:$0]  %s712_s13, 128, %s1285_s6, [#allocation4]  }
 0x1c0   :  { %1111 = dma.done.wait [#allocation4], 128  }
 0x1c1   :  { %1112 = vsyncadd [#allocation4], 4294967168 }
 0x1c2   :  { %1113 = dma.done.wait [#allocation15], 128  }
 0x1c3   :  { %1114 = vsyncadd [#allocation15], 4294967168 }
 0x1c4   :  { %731 = vsyncpa [#allocation3], 1 }
 0x1c5   :  { %732 = vsyncpa [#allocation6], 1 }
 0x1c6   :  { %733 = vsyncpa [#allocation9], 1 }
 0x1c7   :  { %734 = vsyncpa [#allocation12], 1 }
 0x1c8   :  { %735 = vsyncpa [#allocation4], 1 }
 0x1c9   :  { %736 = vsyncpa [#allocation15], 1 }

</bundles_post_ra>
